<compile_context>
chip_gen: v5e
topology: v5e:2x2
jax: 0.10.0
libtpu: 0.0.40
codegen_flags: <defaults>
</compile_context>

<pallas_src>
import functools

import jax
import jax.numpy as jnp
from jax import lax
from jax.experimental import pallas as pl
from jax.experimental.pallas import tpu as pltpu


def _round_up(x, m):
    return (x + m - 1) // m * m


@functools.lru_cache(maxsize=None)
def _bf16_epilogue():
    """bf16 VALU epilogue only where the VPU has a packed-bf16 path (v6e/v7x)."""
    try:
        kind = jax.devices()[0].device_kind.lower()
    except Exception:
        return False
    return ("v6" in kind) or ("v7" in kind) or ("7x" in kind)


def _choose_tile(batch, block_b):
    """Lane-dense batch tile (multiple of 128), VMEM- and megacore-aware."""
    bp0 = _round_up(batch, 128)
    tb = min(_round_up(block_b, 128), 8192, bp0)   # cap for v7x 64 MiB VMEM
    # If the whole padded batch fits in one tile but spans >=2 lane-tiles,
    # split it so the "parallel" grid axis has >=2 steps (v7x: 2 TensorCores).
    if tb >= bp0 and bp0 >= 256:
        tb = _round_up(pl.cdiv(bp0, 2), 128)
    bp = _round_up(batch, tb)
    return tb, bp


def mlp_kernel(x_ref, w1_ref, b1_ref, w2_ref, b2_ref, w3_ref, b3_ref, o_ref,
               *, cb, bf16_epi):
    # x_ref: (tb, in) f32 natural layout     | w*: bf16 PyTorch layout (out_f, in_f)
    # b1/b2: (hidden, 1) f32 | b3: (out, 1) f32 | o_ref: (out, tb) f32 (transposed)
    w1 = w1_ref[...]
    w2 = w2_ref[...]
    w3 = w3_ref[...]
    b3v = b3_ref[...]                                        # (out, 1) f32
    if bf16_epi:
        b1v = b1_ref[...].astype(jnp.bfloat16)
        b2v = b2_ref[...].astype(jnp.bfloat16)
    else:
        b1v = b1_ref[...]
        b2v = b2_ref[...]

    n_chunks = x_ref.shape[0] // cb

    def chunk(c, carry):
        col = pl.multiple_of(c * cb, cb)
        # In-kernel bf16 cast; contraction on x's last axis avoids any wrapper
        # transpose (small per-chunk transpose handled by the XLU).
        xt = x_ref[pl.ds(col, cb), :].astype(jnp.bfloat16)   # (cb, in)

        # Layer 1: MXU bf16 x bf16 -> f32 accumulate.
        h1 = lax.dot_general(w1, xt, (((1,), (1,)), ((), ())),
                             preferred_element_type=jnp.float32)      # (hid, cb)
        if bf16_epi:
            h1 = jnp.maximum(h1.astype(jnp.bfloat16) + b1v, 0)
        else:
            h1 = jnp.maximum(h1 + b1v, 0.0).astype(jnp.bfloat16)
        # dropout(p=0.2) == identity in eval mode

        # Layer 2.
        h2 = jnp.dot(w2, h1, preferred_element_type=jnp.float32)      # (hid, cb)
        if bf16_epi:
            h2 = jnp.maximum(h2.astype(jnp.bfloat16) + b2v, 0)
        else:
            h2 = jnp.maximum(h2 + b2v, 0.0).astype(jnp.bfloat16)
        # dropout(p=0.2) == identity in eval mode

        # Layer 3: lane-dense (out, cb) result, vectorized bias, one dense vst.
        acc = jnp.dot(w3, h2, preferred_element_type=jnp.float32)
        o_ref[:, pl.ds(col, cb)] = (acc + b3v).astype(o_ref.dtype)
        return carry

    lax.fori_loop(0, n_chunks, chunk, 0, unroll=True)


@functools.partial(jax.jit, static_argnames=("block_b",))
def simple_neural_network_forward(x, w1, b1, w2, b2, w3, b3, *, block_b=8192):
    """Fused 3-layer MLP. Weights in PyTorch layout: w (out_f, in_f), b (out_f,)."""
    B, in_size = x.shape
    hidden = w1.shape[0]
    out_size = w3.shape[0]

    tb, bp = _choose_tile(B, block_b)
    grid = (bp // tb,)
    cb = tb if tb <= 512 else next(c for c in (512, 384, 256, 128) if tb % c == 0)

    # Natural layout, f32: only pad the batch axis (no transpose/cast pass).
    x_p = x if bp == B else jnp.pad(x, ((0, bp - B), (0, 0)))
    w1b = w1.astype(jnp.bfloat16)
    w2b = w2.astype(jnp.bfloat16)
    w3b = w3.astype(jnp.bfloat16)
    b1c = b1.astype(jnp.float32).reshape(hidden, 1)
    b2c = b2.astype(jnp.float32).reshape(hidden, 1)
    b3c = b3.astype(jnp.float32).reshape(out_size, 1)

    flops = 2 * bp * (in_size * hidden + hidden * hidden + hidden * out_size)
    bytes_accessed = (x_p.size * 4
                      + (w1b.size + w2b.size + w3b.size) * 2
                      + (b1c.size + b2c.size + b3c.size) * 4
                      + out_size * bp * 4)

    kernel = functools.partial(mlp_kernel, cb=cb, bf16_epi=_bf16_epilogue())

    out_t = pl.pallas_call(
        kernel,
        out_shape=jax.ShapeDtypeStruct((out_size, bp), jnp.float32),
        grid=grid,
        in_specs=[
            pl.BlockSpec((tb, in_size), lambda i: (i, 0)),        # x tile (pipelined)
            pl.BlockSpec((hidden, in_size), lambda i: (0, 0)),    # W1 resident
            pl.BlockSpec((hidden, 1), lambda i: (0, 0)),          # b1 resident
            pl.BlockSpec((hidden, hidden), lambda i: (0, 0)),     # W2 resident
            pl.BlockSpec((hidden, 1), lambda i: (0, 0)),          # b2 resident
            pl.BlockSpec((out_size, hidden), lambda i: (0, 0)),   # W3 resident
            pl.BlockSpec((out_size, 1), lambda i: (0, 0)),        # b3 resident
        ],
        out_specs=pl.BlockSpec((out_size, tb), lambda i: (0, i)), # lane-dense out
        compiler_params=pltpu.CompilerParams(
            dimension_semantics=("parallel",)),                    # 2-TC split on v7x
        cost_estimate=pl.CostEstimate(
            flops=flops, transcendentals=0, bytes_accessed=bytes_accessed),
    )(x_p, w1b, b1c, w2b, b2c, w3b, b3c)

    return out_t[:, :B].T                                          # (B, out_size)


def make_params(key, input_size=10, hidden_size=64, output_size=1):
    """Deterministic PyTorch-style init: w (out_f, in_f), b (out_f,), U(-1/sqrt(fan_in), ...)."""
    ks = jax.random.split(key, 6)

    def linear(kw, kb, fan_in, fan_out):
        bound = 1.0 / (fan_in ** 0.5)
        w = jax.random.uniform(kw, (fan_out, fan_in), jnp.float32, -bound, bound)
        b = jax.random.uniform(kb, (fan_out,), jnp.float32, -bound, bound)
        return w, b

    w1, b1 = linear(ks[0], ks[1], input_size, hidden_size)
    w2, b2 = linear(ks[2], ks[3], hidden_size, hidden_size)
    w3, b3 = linear(ks[4], ks[5], hidden_size, output_size)
    return w1, b1, w2, b2, w3, b3


def ref_forward(x, w1, b1, w2, b2, w3, b3, *, bf16_epilogue):
    """Pure-JAX reference emulating the kernel's bf16-MXU / f32-accumulate numerics."""
    bf16 = jnp.bfloat16

    def mm(a, w):  # a: (B, K), w: (out, K) -> (B, out), f32 accumulation
        return jnp.dot(a.astype(bf16), w.astype(bf16).T,
                       preferred_element_type=jnp.float32)

    h1 = mm(x, w1)
    if bf16_epilogue:
        h1 = jnp.maximum(h1.astype(bf16) + b1.astype(bf16), 0)
        h2 = jnp.maximum(mm(h1, w2).astype(bf16) + b2.astype(bf16), 0)
    else:
        h1 = jnp.maximum(h1 + b1, 0.0)
        h2 = jnp.maximum(mm(h1, w2) + b2, 0.0)
    return mm(h2, w3) + b3


if __name__ == "__main__":
    key = jax.random.PRNGKey(0)
    k_x, k_x2, k_p = jax.random.split(key, 3)

    input_size, hidden_size, output_size = 10, 64, 1
    params = make_params(k_p, input_size, hidden_size, output_size)
    epi = _bf16_epilogue()

    # Small demo batch (single grid step, module-default sizes).
    x_small = jax.random.normal(k_x, (8, input_size), dtype=jnp.float32)
    out_small = jax.block_until_ready(simple_neural_network_forward(x_small, *params))
    ref_small = ref_forward(x_small, *params, bf16_epilogue=epi)
    assert out_small.shape == (8, output_size)
    assert jnp.allclose(out_small, ref_small, atol=1e-2, rtol=1e-2)

    # Ragged batch with a small tile to exercise a 3-step batch grid,
    # weight residency across steps, and padding/slicing.
    x_big = jax.random.normal(k_x2, (300, input_size), dtype=jnp.float32)
    out_big = jax.block_until_ready(
        simple_neural_network_forward(x_big, *params, block_b=128))
    ref_big = ref_forward(x_big, *params, bf16_epilogue=epi)
    assert out_big.shape == (300, output_size)
    assert jnp.allclose(out_big, ref_big, atol=1e-2, rtol=1e-2)

    # Default (large) tile path: exercises the 2-way megacore split of the batch.
    out_big2 = jax.block_until_ready(simple_neural_network_forward(x_big, *params))
    assert jnp.allclose(out_big2, ref_big, atol=1e-2, rtol=1e-2)

    print("KERNEL_OK")
</pallas_src>

<mosaic_0001>
module attributes {stable_mosaic.version = 11 : i64} {
  func.func @mlp_kernel(%arg0: i32, %arg1: memref<128x10xf32, #tpu.memory_space<vmem>>, %arg2: memref<64x10xbf16, #tpu.memory_space<vmem>>, %arg3: memref<64x1xf32, #tpu.memory_space<vmem>>, %arg4: memref<64x64xbf16, #tpu.memory_space<vmem>>, %arg5: memref<64x1xf32, #tpu.memory_space<vmem>>, %arg6: memref<1x64xbf16, #tpu.memory_space<vmem>>, %arg7: memref<1x1xf32, #tpu.memory_space<vmem>>, %arg8: memref<1x128xf32, #tpu.memory_space<vmem>>) attributes {dimension_semantics = [#tpu.dimension_semantics<parallel>], iteration_bounds = array<i64: 1>, scalar_prefetch = 0 : i64, scratch_operands = 0 : i64, tpu.core_type = #tpu.core_type<tc>, window_params = [{transform_indices = @transform_0, window_bounds = array<i64: 128, 10>}, {pipeline_mode = #tpu.pipeline_mode<synchronous>, transform_indices = @transform_1, window_bounds = array<i64: 64, 10>}, {pipeline_mode = #tpu.pipeline_mode<synchronous>, transform_indices = @transform_2, window_bounds = array<i64: 64, 1>}, {pipeline_mode = #tpu.pipeline_mode<synchronous>, transform_indices = @transform_3, window_bounds = array<i64: 64, 64>}, {pipeline_mode = #tpu.pipeline_mode<synchronous>, transform_indices = @transform_4, window_bounds = array<i64: 64, 1>}, {pipeline_mode = #tpu.pipeline_mode<synchronous>, transform_indices = @transform_5, window_bounds = array<i64: 1, 64>}, {pipeline_mode = #tpu.pipeline_mode<synchronous>, transform_indices = @transform_6, window_bounds = array<i64: 1, 1>}, {transform_indices = @transform_7, window_bounds = array<i64: 1, 128>}]} {
    %c0 = arith.constant 0 : index
    %c0_0 = arith.constant 0 : index
    %0 = vector.load %arg2[%c0, %c0_0] : memref<64x10xbf16, #tpu.memory_space<vmem>>, vector<64x10xbf16>
    %c0_1 = arith.constant 0 : index
    %c0_2 = arith.constant 0 : index
    %1 = vector.load %arg4[%c0_1, %c0_2] : memref<64x64xbf16, #tpu.memory_space<vmem>>, vector<64x64xbf16>
    %c0_3 = arith.constant 0 : index
    %c0_4 = arith.constant 0 : index
    %2 = vector.load %arg6[%c0_3, %c0_4] : memref<1x64xbf16, #tpu.memory_space<vmem>>, vector<1x64xbf16>
    %c0_5 = arith.constant 0 : index
    %c0_6 = arith.constant 0 : index
    %3 = vector.load %arg7[%c0_5, %c0_6] : memref<1x1xf32, #tpu.memory_space<vmem>>, vector<1x1xf32>
    %c0_7 = arith.constant 0 : index
    %c0_8 = arith.constant 0 : index
    %4 = vector.load %arg3[%c0_7, %c0_8] : memref<64x1xf32, #tpu.memory_space<vmem>>, vector<64x1xf32>
    %c0_9 = arith.constant 0 : index
    %c0_10 = arith.constant 0 : index
    %5 = vector.load %arg5[%c0_9, %c0_10] : memref<64x1xf32, #tpu.memory_space<vmem>>, vector<64x1xf32>
    %c0_i32 = arith.constant 0 : i32
    %c128_i32 = arith.constant 128 : i32
    %6 = arith.muli %c0_i32, %c128_i32 : i32
    %7 = tpu.assume_multiple %6, 128 : i32
    %8 = arith.index_cast %7 : i32 to index
    %c0_11 = arith.constant 0 : index
    %9 = vector.load %arg1[%8, %c0_11] : memref<128x10xf32, #tpu.memory_space<vmem>>, vector<128x10xf32>
    %10 = arith.truncf %9 : vector<128x10xf32> to vector<128x10xbf16>
    %cst = arith.constant dense<0.000000e+00> : vector<64x128xf32>
    %11 = tpu.matmul %0, %10, %cst {dimension_numbers = #tpu.dot_dimension_numbers<[1], [1], [0], [0], [0, 0, 1, 0], [], []>} : vector<64x10xbf16>, vector<128x10xbf16>, vector<64x128xf32> -> vector<64x128xf32>
    %12 = vector.broadcast %4 : vector<64x1xf32> to vector<64x128xf32>
    %13 = arith.addf %11, %12 : vector<64x128xf32>
    %cst_12 = arith.constant 0.000000e+00 : f32
    %14 = vector.broadcast %cst_12 : f32 to vector<64x128xf32>
    %15 = arith.maximumf %13, %14 : vector<64x128xf32>
    %16 = arith.truncf %15 : vector<64x128xf32> to vector<64x128xbf16>
    %cst_13 = arith.constant dense<0.000000e+00> : vector<64x128xf32>
    %17 = tpu.matmul %1, %16, %cst_13 {dimension_numbers = #tpu.dot_dimension_numbers<[1], [0], [0], [1], [0, 0, 1, 1], [], []>} : vector<64x64xbf16>, vector<64x128xbf16>, vector<64x128xf32> -> vector<64x128xf32>
    %18 = vector.broadcast %5 : vector<64x1xf32> to vector<64x128xf32>
    %19 = arith.addf %17, %18 : vector<64x128xf32>
    %cst_14 = arith.constant 0.000000e+00 : f32
    %20 = vector.broadcast %cst_14 : f32 to vector<64x128xf32>
    %21 = arith.maximumf %19, %20 : vector<64x128xf32>
    %22 = arith.truncf %21 : vector<64x128xf32> to vector<64x128xbf16>
    %cst_15 = arith.constant dense<0.000000e+00> : vector<1x128xf32>
    %23 = tpu.matmul %2, %22, %cst_15 {dimension_numbers = #tpu.dot_dimension_numbers<[1], [0], [0], [1], [0, 0, 1, 1], [], []>} : vector<1x64xbf16>, vector<64x128xbf16>, vector<1x128xf32> -> vector<1x128xf32>
    %24 = vector.broadcast %3 : vector<1x1xf32> to vector<1x128xf32>
    %25 = arith.addf %23, %24 : vector<1x128xf32>
    %c0_16 = arith.constant 0 : index
    %26 = arith.index_cast %7 : i32 to index
    %27 = vector.load %arg8[%c0_16, %26] : memref<1x128xf32, #tpu.memory_space<vmem>>, vector<1x128xf32>
    tpu.vector_store %arg8[%c0_16, %26], %25 {strides = array<i32>} : memref<1x128xf32, #tpu.memory_space<vmem>>, vector<1x128xf32>,
    %c1_i32 = arith.constant 1 : i32
    return
  }
  func.func @transform_0(%arg0: i32) -> (i32, i32) {
    %c0_i32 = arith.constant 0 : i32
    %c0_i32_0 = arith.constant 0 : i32
    return %arg0, %c0_i32 : i32, i32
  }
  func.func @transform_1(%arg0: i32) -> (i32, i32) {
    %c0_i32 = arith.constant 0 : i32
    %c0_i32_0 = arith.constant 0 : i32
    %c0_i32_1 = arith.constant 0 : i32
    return %c0_i32, %c0_i32_0 : i32, i32
  }
  func.func @transform_2(%arg0: i32) -> (i32, i32) {
    %c0_i32 = arith.constant 0 : i32
    %c0_i32_0 = arith.constant 0 : i32
    %c0_i32_1 = arith.constant 0 : i32
    return %c0_i32, %c0_i32_0 : i32, i32
  }
  func.func @transform_3(%arg0: i32) -> (i32, i32) {
    %c0_i32 = arith.constant 0 : i32
    %c0_i32_0 = arith.constant 0 : i32
    %c0_i32_1 = arith.constant 0 : i32
    return %c0_i32, %c0_i32_0 : i32, i32
  }
  func.func @transform_4(%arg0: i32) -> (i32, i32) {
    %c0_i32 = arith.constant 0 : i32
    %c0_i32_0 = arith.constant 0 : i32
    %c0_i32_1 = arith.constant 0 : i32
    return %c0_i32, %c0_i32_0 : i32, i32
  }
  func.func @transform_5(%arg0: i32) -> (i32, i32) {
    %c0_i32 = arith.constant 0 : i32
    %c0_i32_0 = arith.constant 0 : i32
    %c0_i32_1 = arith.constant 0 : i32
    return %c0_i32, %c0_i32_0 : i32, i32
  }
  func.func @transform_6(%arg0: i32) -> (i32, i32) {
    %c0_i32 = arith.constant 0 : i32
    %c0_i32_0 = arith.constant 0 : i32
    %c0_i32_1 = arith.constant 0 : i32
    return %c0_i32, %c0_i32_0 : i32, i32
  }
  func.func @transform_7(%arg0: i32) -> (i32, i32) {
    %c0_i32 = arith.constant 0 : i32
    %c0_i32_0 = arith.constant 0 : i32
    return %c0_i32, %arg0 : i32, i32
  }
}

</mosaic_0001>

<bundles_post_ra>
// kernel: simple_neural_network_forward.1
= control target key start
LH: loop header
LB: loop body
LE: loop exit
PB: predicated region body
PF: predicated region fallthrough
CT: control target
= control target key end

     0   :  { %vm147_vm0 = vcmask 80896   ;;  %v435_v16 = vmov 0   ;;  %vm285_vm1 = vcmask 523264   ;;  %s622_s0 = inlined_call_operand.vmem [shape: f32[128,10], index: 0, kind: input, shape index: {}]   ;;  %s623_s2 = inlined_call_operand.vmem [shape: f32[64,1], index: 2, kind: input, shape index: {}]   ;;  %s624_s4 = inlined_call_operand.vmem [shape: f32[64,1], index: 4, kind: input, shape index: {}]   ;;  %s625_s6 = inlined_call_operand.<no memory space> [shape: f32[1,1], index: 6, kind: input, shape index: {}]   ;;  %s626_s1 = inlined_call_operand.vmem [shape: bf16[64,10], index: 1, kind: input, shape index: {}]   ;;  %s627_s3 = inlined_call_operand.vmem [shape: bf16[64,64], index: 3, kind: input, shape index: {}]   ;;  %s628_s5 = inlined_call_operand.vmem [shape: bf16[1,64], index: 5, kind: input, shape index: {}]   ;;  %s629_s7 = inlined_call_operand.vmem [shape: f32[1,128], index: 7, kind: output, shape index: {}]  }
   0x1   :  { %v77_v0 = vld [vmem:[%s622_s0 + $0x70] sm:$0xff]  ;;  %v78_v1 = vld [vmem:[%s622_s0 + $0x78] sm:$0xff]  ;;  %v75_v3 = vld [vmem:[%s622_s0 + $0x60] sm:$0xff]  ;;  %432 = vset.pattern.permute.xlu0 %v435_v16  ;;  %433 = vset.pattern.permute.xlu1 %v435_v16  ;;  %v12_v39 = vstv %s625_s6 }
   0x2   :  { %v86_v2 = vpack.c.bf16 %v78_v1, %v77_v0  ;;  %v76_v4 = vld [vmem:[%s622_s0 + $0x68] sm:$0xff]  ;;  %v73_v8 = vld [vmem:[%s622_s0 + $0x50] sm:$0xff]  ;;  %v74_v9 = vld [vmem:[%s622_s0 + $0x58] sm:$0xff]  ;;  %434 = vset.pattern.permute.xlu2 %v435_v16  ;;  %13 = vst [vmem:[#allocation2] sm:$0x1] %v12_v39 }
   0x3   :  { %v85_v6 = vpack.c.bf16 %v76_v4, %v75_v3  ;;  %v84_v10 = vpack.c.bf16 %v74_v9, %v73_v8  ;;  %v71_v12 = vld [vmem:[%s622_s0 + $0x40] sm:$0xff]  ;;  %v72_v13 = vld [vmem:[%s622_s0 + $0x48] sm:$0xff]  ;;  %v53_v14 = vld [vmem:[%s623_s2 + $0x30] sm:$0xff] }
   0x4   :  { %v182_v5 = vsel %vm147_vm0, %v86_v2, 0  ;;  %v83_v15 = vpack.c.bf16 %v72_v13, %v71_v12  ;;  %119 = vperm.xlu0 %432, %v53_v14   ;;  %v69_v18 = vld [vmem:[%s622_s0 + $0x30] sm:$0xff]  ;;  %v70_v19 = vld [vmem:[%s622_s0 + $0x38] sm:$0xff]  ;;  %v51_v20 = vld [vmem:[%s623_s2 + $0x20] sm:$0xff] }
   0x5   :  { %416 = vmatpush.bf16.xpose.msra.mxu3 %v182_v5  ;;  %184 = vmatpush.bf16.xpose.msra.mxu0 %v182_v5  ;;  %v179_v7 = vsel %vm147_vm0, %v85_v6, 0  ;;  %v176_v11 = vsel %vm147_vm0, %v84_v10, 0  ;;  %v82_v21 = vpack.c.bf16 %v70_v19, %v69_v18  ;;  %v67_v23 = vld [vmem:[%s622_s0 + $0x20] sm:$0xff]  ;;  %v68_v24 = vld [vmem:[%s622_s0 + $0x28] sm:$0xff]  ;;  %v54_v25 = vld [vmem:[%s623_s2 + $0x38] sm:$0xff] }
   0x6   :  { %415 = vmatpush.bf16.xpose.msra.mxu2 %v182_v5  ;;  %v173_v17 = vsel %vm147_vm0, %v83_v15, 0  ;;  %109 = vperm.xlu1 %433, %v51_v20   ;;  %v52_v26 = vld [vmem:[%s623_s2 + $0x28] sm:$0xff]  ;;  %v81_v27 = vpack.c.bf16 %v68_v24, %v67_v23  ;;  %v65_v29 = vld [vmem:[%s622_s0 + $0x10] sm:$0xff]  ;;  %v66_v30 = vld [vmem:[%s622_s0 + $0x18] sm:$0xff] }
   0x7   :  { %v170_v22 = vsel %vm147_vm0, %v82_v21, 0  ;;  %v47_v31 = vld [vmem:[%s623_s2] sm:$0xff]  ;;  %v48_v32 = vld [vmem:[%s623_s2 + $0x8] sm:$0xff]  ;;  %v80_v33 = vpack.c.bf16 %v66_v30, %v65_v29  ;;  %v62_v37 = vld [vmem:[%s624_s4 + $0x38] sm:$0xff] }
   0x8   :  { %v167_v28 = vsel %vm147_vm0, %v81_v27, 0  ;;  %v63_v35 = vld [vmem:[%s622_s0] sm:$0xff]  ;;  %v64_v36 = vld [vmem:[%s622_s0 + $0x8] sm:$0xff]  ;;  %v49_v40 = vld [vmem:[%s623_s2 + $0x10] sm:$0xff] }
   0x9   :  { %v164_v34 = vsel %vm147_vm0, %v80_v33, 0  ;;  %v59_v38 = vld [vmem:[%s624_s4 + $0x20] sm:$0xff]  ;;  %v79_v41 = vpack.c.bf16 %v64_v36, %v63_v35  ;;  %99 = vperm.xlu2 %434, %v49_v40   ;;  %v57_v43 = vld [vmem:[%s624_s4 + $0x10] sm:$0xff]  ;;  %v58_v44 = vld [vmem:[%s624_s4 + $0x18] sm:$0xff] }
   0xa   :  { %v50_v45 = vld [vmem:[%s623_s2 + $0x18] sm:$0xff]  ;;  %v409_v46 = vld [vmem:[%s626_s1 + $0x10] sm:$0xff]  ;;  %v407_v47 = vld [vmem:[%s626_s1] sm:$0xff] }
   0xb   :  { %v161_v42 = vsel %vm147_vm0, %v79_v41, 0  ;;  %v408_v48 = vld [vmem:[%s626_s1 + $0x8] sm:$0xff]  ;;  %v46_v50 = vld [vmem:[#allocation2] sm:$0x1]  ;;  %v61_v51 = vld [vmem:[%s624_s4 + $0x30] sm:$0xff] }
   0xc   :  { %124 = vperm.xlu0 %432, %v54_v25   ;;  %v56_v49 = vld [vmem:[%s624_s4 + $0x8] sm:$0xff]  ;;  %v410_v53 = vld [vmem:[%s626_s1 + $0x18] sm:$0xff]  ;;  %v55_v54 = vld [vmem:[%s624_s4] sm:$0xff] }
   0xd   :  { %418 = vmatpush.bf16.xpose.msra.mxu3 %v179_v7  ;;  %185 = vmatpush.bf16.xpose.msra.mxu0 %v179_v7  ;;  %v60_v52 = vld [vmem:[%s624_s4 + $0x28] sm:$0xff]  ;;  %v411_v27 = vld [vmem:[%s627_s3] sm:$0xff]  ;;  %v413_v29 = vld [vmem:[%s627_s3 + $0x10] sm:$0xff] }
   0xe   :  { %417 = vmatpush.bf16.xpose.msra.mxu2 %v179_v7  ;;  %114 = vperm.xlu1 %433, %v52_v26   ;;  %v414_v30 = vld [vmem:[%s627_s3 + $0x18] sm:$0xff] }
  0x11   :  { %104 = vperm.xlu2 %434, %v50_v45  }
  0x14   :  { %89 = vperm.xlu0 %432, %v47_v31  }
  0x15   :  { %420 = vmatpush.bf16.xpose.msra.mxu3 %v176_v11  ;;  %186 = vmatpush.bf16.xpose.msra.mxu0 %v176_v11 }
  0x16   :  { %419 = vmatpush.bf16.xpose.msra.mxu2 %v176_v11  ;;  %94 = vperm.xlu1 %433, %v48_v32  }
  0x19   :  { %257 = vperm.xlu2 %434, %v61_v51  }
  0x1c   :  { %262 = vperm.xlu0 %432, %v62_v37  }
  0x1d   :  { %422 = vmatpush.bf16.xpose.msra.mxu3 %v173_v17  ;;  %187 = vmatpush.bf16.xpose.msra.mxu0 %v173_v17 }
  0x1e   :  { %421 = vmatpush.bf16.xpose.msra.mxu2 %v173_v17  ;;  %247 = vperm.xlu1 %433, %v59_v38  }
  0x21   :  { %252 = vperm.xlu2 %434, %v60_v52  }
  0x24   :  { %237 = vperm.xlu0 %432, %v57_v43  }
  0x25   :  { %424 = vmatpush.bf16.xpose.msra.mxu3 %v170_v22  ;;  %188 = vmatpush.bf16.xpose.msra.mxu0 %v170_v22 }
  0x26   :  { %423 = vmatpush.bf16.xpose.msra.mxu2 %v170_v22  ;;  %242 = vperm.xlu1 %433, %v58_v44  }
  0x29   :  { %227 = vperm.xlu2 %434, %v55_v54  }
  0x2c   :  { %232 = vperm.xlu0 %432, %v56_v49  }
  0x2d   :  { %426 = vmatpush.bf16.xpose.msra.mxu3 %v167_v28  ;;  %189 = vmatpush.bf16.xpose.msra.mxu0 %v167_v28 }
  0x2e   :  { %425 = vmatpush.bf16.xpose.msra.mxu2 %v167_v28  ;;  %341 = vperm.xlu1 %433, %v46_v50   ;;  %v412_v28 = vld [vmem:[%s627_s3 + $0x8] sm:$0xff] }
  0x35   :  { %428 = vmatpush.bf16.xpose.msra.mxu3 %v164_v34  ;;  %190 = vmatpush.bf16.xpose.msra.mxu0 %v164_v34 }
  0x36   :  { %427 = vmatpush.bf16.xpose.msra.mxu2 %v164_v34 }
  0x3d   :  { %430 = vmatpush.bf16.xpose.msra.mxu3 %v161_v42  ;;  %191 = vmatpush.bf16.xpose.msra.mxu0 %v161_v42 }
  0x3e   :  { %429 = vmatpush.bf16.xpose.msra.mxu2 %v161_v42 }
  0x44   :  { %384 = vmatmul.msk.bf16.vlgmr.msra.gmra.mxu3 %vm147_vm0, %v409_v46  ;;  %382 = vmatmul.msk.bf16.vlgmr.msra.gmra.mxu0 %vm147_vm0, %v407_v47 }
  0x45   :  { %383 = vmatmul.msk.bf16.vlgmr.msra.gmra.mxu2 %vm147_vm0, %v408_v48 }
  0x54   :  { %385 = vmatmul.msk.bf16.gmra.mxu3 %vm147_vm0, %v410_v53 }
  0x63   :  { %v100_v61 = vpop.permute.xlu2 %99 }
  0x6b   :  { %v105_v9 = vpop.permute.xlu2 %104 }
  0x73   :  { %v258_v38 = vpop.permute.xlu2 %257 }
  0x76   :  { %v120_v57 = vpop.permute.xlu0 %119 }
  0x78   :  { %v110_v58 = vpop.permute.xlu1 %109 }
  0x7b   :  { %v253_v43 = vpop.permute.xlu2 %252 }
  0x7e   :  { %v125_v63 = vpop.permute.xlu0 %124 }
  0x80   :  { %v115_v0 = vpop.permute.xlu1 %114 }
  0x86   :  { %v90_v15 = vpop.permute.xlu0 %89 }
  0x88   :  { %v95_v17 = vpop.permute.xlu1 %94 }
  0x8e   :  { %v263_v37 = vpop.permute.xlu0 %262 }
  0x90   :  { %v248_v40 = vpop.permute.xlu1 %247 }
  0x96   :  { %v238_v41 = vpop.permute.xlu0 %237 }
  0x98   :  { %v243_v50 = vpop.permute.xlu1 %242 }
  0xc1   :  { %v193_v62 = vpop.f32.mrf.mxu0 }
  0xc2   :  { %v194_v18 = vadd.f32 %v193_v62, %v90_v15 }
  0xc4   :  { %v213_v23 = vmax.f32 %v194_v18, 0.0 }
  0xc7   :  { %v203_v55 = vpop.f32.mrf.mxu3 }
  0xc8   :  { %v198_v59 = vpop.f32.mrf.mxu2  ;;  %v204_v6 = vadd.f32 %v203_v55, %v110_v58 }
  0xc9   :  { %v199_v11 = vadd.f32 %v198_v59, %v100_v61  ;;  %v195_v14 = vpop.f32.mrf.mxu0 }
  0xca   :  { %v217_v16 = vmax.f32 %v204_v6, 0.0  ;;  %v196_v19 = vadd.f32 %v195_v14, %v95_v17 }
  0xcb   :  { %v215_v20 = vmax.f32 %v199_v11, 0.0 }
  0xcc   :  { %v214_v24 = vmax.f32 %v196_v19, 0.0 }
  0xce   :  { %v221_v26 = vpack.c.bf16 %v214_v24, %v213_v23 }
  0xcf   :  { %v205_v56 = vpop.f32.mrf.mxu3 }
  0xd0   :  { %v206_v3 = vadd.f32 %v205_v56, %v115_v0  ;;  %v200_v5 = vpop.f32.mrf.mxu2  ;;  %v233_v56 = vpop.permute.xlu0 %232 }
  0xd1   :  { %v201_v12 = vadd.f32 %v200_v5, %v105_v9 }
  0xd2   :  { %v218_v10 = vmax.f32 %v206_v3, 0.0  ;;  %v45_v3 = vld [vmem:[%s628_s5] sm:$0x1] }
  0xd3   :  { %v216_v21 = vmax.f32 %v201_v12, 0.0 }
  0xd4   :  { %v223_v22 = vpack.c.bf16 %v218_v10, %v217_v16 }
  0xd5   :  { %v222_v25 = vpack.c.bf16 %v216_v21, %v215_v20 }
  0xd7   :  { %v208_v60 = vpop.f32.mrf.mxu3 }
  0xd8   :  { %v209_v1 = vadd.f32 %v208_v60, %v120_v57  ;;  %v228_v60 = vpop.permute.xlu2 %227 }
  0xda   :  { %v219_v7 = vmax.f32 %v209_v1, 0.0 }
  0xdf   :  { %v210_v2 = vpop.f32.mrf.mxu3 }
  0xe0   :  { %v211_v4 = vadd.f32 %v210_v2, %v125_v63 }
  0xe2   :  { %v220_v8 = vmax.f32 %v211_v4, 0.0  ;;  %v342_v4 = vpop.permute.xlu1 %341 }
  0xe3   :  { %v344_v5 = vperm.slane %v342_v4, 0 }
  0xe4   :  { %v224_v13 = vpack.c.bf16 %v220_v8, %v219_v7 }
  0xe6   :  { %302 = vmatpush.bf16.msra.mxu1 %v224_v13 }
  0xea   :  { %303 = vmatpush.bf16.msra.mxu1 %v223_v22 }
  0xee   :  { %304 = vmatpush.bf16.msra.mxu1 %v222_v25 }
  0xf2   :  { %305 = vmatpush.bf16.msra.mxu1 %v221_v26 }
  0xf5   :  { %402 = vmatmul.msk.bf16.vlgmr.msra.gmra.mxu1 %vm285_vm1, %v411_v27 }
 0x105   :  { %403 = vmatmul.msk.bf16.gmra.mxu1 %vm285_vm1, %v412_v28 }
 0x115   :  { %404 = vmatmul.msk.bf16.gmra.mxu1 %vm285_vm1, %v413_v29 }
 0x125   :  { %405 = vmatmul.msk.bf16.gmra.mxu1 %vm285_vm1, %v414_v30 }
 0x172   :  { %v307_v31 = vpop.f32.mrf.mxu1 }
 0x173   :  { %v308_v61 = vadd.f32 %v307_v31, %v228_v60 }
 0x175   :  { %v327_v1 = vmax.f32 %v308_v61, 0.0 }
 0x17a   :  { %v309_v32 = vpop.f32.mrf.mxu1 }
 0x17b   :  { %v310_v57 = vadd.f32 %v309_v32, %v233_v56 }
 0x17d   :  { %v328_v63 = vmax.f32 %v310_v57, 0.0 }
 0x17f   :  { %v335_v2 = vpack.c.bf16 %v328_v63, %v327_v1 }
 0x182   :  { %v312_v33 = vpop.f32.mrf.mxu1 }
 0x183   :  { %v313_v54 = vadd.f32 %v312_v33, %v238_v41 }
 0x185   :  { %v329_v62 = vmax.f32 %v313_v54, 0.0 }
 0x18a   :  { %v314_v34 = vpop.f32.mrf.mxu1 }
 0x18b   :  { %v315_v51 = vadd.f32 %v314_v34, %v243_v50 }
 0x18d   :  { %v330_v58 = vmax.f32 %v315_v51, 0.0 }
 0x18f   :  { %v336_v0 = vpack.c.bf16 %v330_v58, %v329_v62 }
 0x192   :  { %v317_v35 = vpop.f32.mrf.mxu1 }
 0x193   :  { %v318_v47 = vadd.f32 %v317_v35, %v248_v40 }
 0x195   :  { %v331_v55 = vmax.f32 %v318_v47, 0.0 }
 0x19a   :  { %v319_v36 = vpop.f32.mrf.mxu1 }
 0x19b   :  { %v320_v45 = vadd.f32 %v319_v36, %v253_v43 }
 0x19d   :  { %v332_v52 = vmax.f32 %v320_v45, 0.0 }
 0x19f   :  { %v337_v59 = vpack.c.bf16 %v332_v52, %v331_v55 }
 0x1a2   :  { %v322_v39 = vpop.f32.mrf.mxu1 }
 0x1a3   :  { %v323_v42 = vadd.f32 %v322_v39, %v258_v38 }
 0x1a5   :  { %v333_v48 = vmax.f32 %v323_v42, 0.0 }
 0x1aa   :  { %v324_v44 = vpop.f32.mrf.mxu1 }
 0x1ab   :  { %v325_v46 = vadd.f32 %v324_v44, %v263_v37 }
 0x1ad   :  { %v334_v49 = vmax.f32 %v325_v46, 0.0 }
 0x1af   :  { %v338_v53 = vpack.c.bf16 %v334_v49, %v333_v48 }
 0x1b1   :  { %352 = vmatpush.bf16.msrb.mxu2 %v338_v53 }
 0x1b5   :  { %353 = vmatpush.bf16.msrb.mxu2 %v337_v59 }
 0x1b9   :  { %354 = vmatpush.bf16.msrb.mxu2 %v336_v0 }
 0x1bd   :  { %355 = vmatpush.bf16.msrb.mxu2 %v335_v2 }
 0x1c0   :  { %406 = vmatmul.msk.bf16.vlgmr.msrb.gmra.mxu2 %vm285_vm1, %v45_v3 }
 0x243   :  { %v357_v6 = vpop.f32.mrf.mxu2 }
 0x244   :  { %v358_v7 = vadd.f32 %v357_v6, %v344_v5 }
 0x246   :  { %361 = vst [vmem:[%s629_s7] sm:$0x1] %v358_v7 }
 0x24b   :  { %v359_v8 = vpop.f32.mrf.mxu2 }

</bundles_post_ra>
